<compile_context>
chip_gen: v6e
topology: v6e:2x2x1
jax: 0.10.0
libtpu: 0.0.40
codegen_flags: <defaults>
</compile_context>

<pallas_src>
import functools

import jax
import jax.numpy as jnp
from jax.experimental import pallas as pl
from jax.experimental.pallas import tpu as pltpu


def _round_up(v, m):
    return (v + m - 1) // m * m


def _vmem_capacity_bytes():
    """Per-core VMEM capacity; conservative (v7x) fallback if the query fails."""
    try:
        return int(pltpu.get_tpu_info().vmem_capacity_bytes)
    except Exception:
        return 64 * 1024 * 1024


def _attention_math(x, w, b, u_row, mask, t_valid):
    """x:(Bb,Tp,D), w:(D,A), b:(1,A), u_row:(1,A), mask:(Bb,Tp) or None -> (Bb,D) f32."""
    Bb, Tp, D = x.shape
    A = w.shape[1]

    # One fused MXU matmul over every row in the batch tile: (Bb*Tp, D) @ (D, A).
    # Tp is a multiple of 8, so this reshape is layout-preserving (no VMEM copy).
    et = jnp.tanh(
        jnp.dot(x.reshape(Bb * Tp, D), w, preferred_element_type=jnp.float32)
        + b.astype(jnp.float32)
    )  # (Bb*Tp, A) f32

    # scores: VPU multiply by u (broadcast over A) + lane reduce over A.  Avoids the
    # degenerate N=1 matmul and the (Bb*Tp, 1) -> (Bb, Tp) relayout.
    scores = jnp.sum(et.reshape(Bb, Tp, A) * u_row.astype(jnp.float32), axis=-1)  # (Bb,Tp)

    if t_valid < Tp:  # static: keep padded sequence positions out of the softmax
        t_ids = jax.lax.broadcasted_iota(jnp.int32, (Bb, Tp), 1)
        scores = jnp.where(t_ids < t_valid, scores, -jnp.inf)

    # Softmax over the sequence axis (lane-axis reductions), all in f32.
    m = jnp.max(scores, axis=-1, keepdims=True)
    e = jnp.exp(scores - m)
    at = e / jnp.sum(e, axis=-1, keepdims=True)  # (Bb, Tp)

    if mask is not None:
        # Matches the PyTorch module: mask applied AFTER softmax, no renormalization.
        at = at * mask.astype(jnp.float32)

    # Weighted sum over T (sublane reduction) -> lane-dense (Bb, D) f32 tile.  The
    # broadcast temp is counted in the VMEM budget used to size b_blk.
    # TODO(synk): chunk this reduction over Tp if bundle dumps show spills at huge tiles.
    return jnp.sum(at[:, :, None] * x, axis=1)


def _kernel_masked(x_ref, w_ref, b_ref, u_ref, mask_ref, o_ref, *, t_valid):
    out = _attention_math(x_ref[...], w_ref[...], b_ref[...], u_ref[...],
                          mask_ref[...], t_valid)
    o_ref[...] = out.astype(o_ref.dtype)


def _kernel_nomask(x_ref, w_ref, b_ref, u_ref, o_ref, *, t_valid):
    out = _attention_math(x_ref[...], w_ref[...], b_ref[...], u_ref[...],
                          None, t_valid)
    o_ref[...] = out.astype(o_ref.dtype)


def self_attention(x, W, b, u, mask=None, *, stream_dtype=None):
    """Pallas forward of the PyTorch SelfAttention module.

    x: (B, T, D); W: (D, A); b: (1, A); u: (A, 1); mask: (B, T) or None.
    stream_dtype: optional narrower dtype (e.g. jnp.bfloat16) used to stream x and W
      from HBM / through the MXU.  None keeps x's dtype (exact-f32 path).
    Returns (B, D) in x's original dtype.
    """
    B, T, D = x.shape
    A = W.shape[1]
    out_dtype = x.dtype

    # ---- dtype plumbing ------------------------------------------------------
    if stream_dtype is not None:
        x = x.astype(stream_dtype)
        W = W.astype(stream_dtype)
    u_row = u.reshape(1, A).astype(jnp.float32)
    b = b.astype(jnp.float32)
    if mask is not None and not jnp.issubdtype(mask.dtype, jnp.floating):
        mask = mask.astype(jnp.bfloat16)  # narrow 0/1 stream; cast to f32 in-kernel

    # ---- pad T to a multiple of 8 (layout-preserving in-kernel reshapes) ----
    Tp = _round_up(T, 8)
    if Tp != T:
        x = jnp.pad(x, ((0, 0), (0, Tp - T), (0, 0)))
        if mask is not None:
            mask = jnp.pad(mask, ((0, 0), (0, Tp - T)))

    # ---- batch-tile sizing from a VMEM byte budget ---------------------------
    itemsize_x = jnp.dtype(x.dtype).itemsize
    vmem_cap = _vmem_capacity_bytes()
    budget = vmem_cap // 2  # leave ample headroom for the compiler / pipelining

    mask_term = 2 * jnp.dtype(mask.dtype).itemsize if mask is not None else 0
    # Per-batch-row VMEM footprint: double-buffered x, f32 broadcast temp (+slack),
    # tanh activations, double-buffered mask + output row.
    per_row_bytes = Tp * (2 * D * itemsize_x + 2 * D * 4 + A * 4 + mask_term) + 2 * D * 4

    b_cap_budget = max(8, (budget // per_row_bytes) // 8 * 8)
    b_cap_stream = max(8, ((8 << 20) // (Tp * D * itemsize_x)) // 8 * 8)  # x block <= 8 MiB
    b_cap = min(b_cap_budget, b_cap_stream)

    # Guarantee >= 2 grid steps so both v7x TensorCores get work.
    b_half = _round_up((B + 1) // 2, 8)
    b_blk = int(max(8, min(b_cap, b_half)))

    Bp = _round_up(max(B, 2 * b_blk), b_blk)
    if Bp != B:
        x = jnp.pad(x, ((0, Bp - B), (0, 0), (0, 0)))
        if mask is not None:
            mask = jnp.pad(mask, ((0, Bp - B), (0, 0)))
    grid = (Bp // b_blk,)

    small_bytes = (D * A * itemsize_x + 8 * A) * 2
    vmem_limit = int(min(int(0.75 * vmem_cap),
                         max(32 << 20, b_blk * per_row_bytes + small_bytes + (4 << 20))))

    # ---- specs ---------------------------------------------------------------
    x_spec = pl.BlockSpec((b_blk, Tp, D), lambda i: (i, 0, 0))
    w_spec = pl.BlockSpec((D, A), lambda i: (0, 0))
    b_spec = pl.BlockSpec((1, A), lambda i: (0, 0))
    u_spec = pl.BlockSpec((1, A), lambda i: (0, 0))
    out_spec = pl.BlockSpec((b_blk, D), lambda i: (i, 0))
    out_shape = jax.ShapeDtypeStruct((Bp, D), out_dtype)
    cparams = pltpu.CompilerParams(
        dimension_semantics=("parallel",),
        vmem_limit_bytes=vmem_limit,
    )

    if mask is None:
        out = pl.pallas_call(
            functools.partial(_kernel_nomask, t_valid=T),
            out_shape=out_shape,
            grid=grid,
            in_specs=[x_spec, w_spec, b_spec, u_spec],
            out_specs=out_spec,
            compiler_params=cparams,
        )(x, W, b, u_row)
    else:
        mask_spec = pl.BlockSpec((b_blk, Tp), lambda i: (i, 0))
        out = pl.pallas_call(
            functools.partial(_kernel_masked, t_valid=T),
            out_shape=out_shape,
            grid=grid,
            in_specs=[x_spec, w_spec, b_spec, u_spec, mask_spec],
            out_specs=out_spec,
            compiler_params=cparams,
        )(x, W, b, u_row, mask)

    return out[:B]


def init_params(key, input_dimensions, attention_size):
    """Deterministic init mirroring the PyTorch reset_parameters()."""
    kW, ku = jax.random.split(key)
    std_W = (2.0 / (input_dimensions + attention_size)) ** 0.5  # xavier_normal_
    std_u = (2.0 / (attention_size + 1)) ** 0.5
    W = jax.random.normal(kW, (input_dimensions, attention_size), jnp.float32) * std_W
    b = jnp.zeros((1, attention_size), jnp.float32)
    u = jax.random.normal(ku, (attention_size, 1), jnp.float32) * std_u
    return W, b, u


def self_attention_ref(x, W, b, u, mask=None):
    """Pure-JAX reference for correctness checking."""
    et = jnp.tanh(x @ W + b)                  # (B, T, A)
    scores = jnp.squeeze(et @ u, axis=-1)     # (B, T)
    at = jax.nn.softmax(scores, axis=-1)      # (B, T)
    if mask is not None:
        at = at * mask.astype(jnp.float32)
    return jnp.sum(at[..., None] * x, axis=1)  # (B, D)


if __name__ == "__main__":
    B, T, D, A = 2, 8, 32, 16   # batch, seq, input_dimensions, attention_size

    key = jax.random.PRNGKey(0)
    kx, kp, km = jax.random.split(key, 3)
    x = jax.random.normal(kx, (B, T, D), jnp.float32)
    W, b, u = init_params(kp, D, A)
    mask = jax.random.uniform(km, (B, T)) > 0.3          # bool mask (narrow stream)
    mask_f = mask.astype(jnp.float32)

    # Exact f32 path, no mask.
    out = jax.block_until_ready(self_attention(x, W, b, u))
    ref = self_attention_ref(x, W, b, u)
    assert out.shape == (B, D)
    assert jnp.allclose(out, ref, atol=1e-5, rtol=1e-5)

    # Exact f32 path, masked (mask applied after softmax, matching the PyTorch module).
    out_m = jax.block_until_ready(self_attention(x, W, b, u, mask))
    ref_m = self_attention_ref(x, W, b, u, mask_f)
    assert out_m.shape == (B, D)
    assert jnp.allclose(out_m, ref_m, atol=1e-5, rtol=1e-5)

    # bf16-streamed path (HBM-bandwidth optimization) -- relaxed tolerance.
    out_bf = jax.block_until_ready(
        self_attention(x, W, b, u, mask, stream_dtype=jnp.bfloat16))
    assert out_bf.shape == (B, D)
    assert jnp.allclose(out_bf, ref_m, atol=5e-2, rtol=5e-2)

    print("KERNEL_OK")
</pallas_src>

<mosaic_0001>
module attributes {stable_mosaic.version = 11 : i64} {
  func.func @_kernel_nomask(%arg0: i32, %arg1: memref<8x8x32xf32, #tpu.memory_space<vmem>>, %arg2: memref<32x16xf32, #tpu.memory_space<vmem>>, %arg3: memref<1x16xf32, #tpu.memory_space<vmem>>, %arg4: memref<1x16xf32, #tpu.memory_space<vmem>>, %arg5: memref<8x32xf32, #tpu.memory_space<vmem>>) attributes {dimension_semantics = [#tpu.dimension_semantics<parallel>], iteration_bounds = array<i64: 2>, scalar_prefetch = 0 : i64, scratch_operands = 0 : i64, tpu.core_type = #tpu.core_type<tc>, window_params = [{transform_indices = @transform_0, window_bounds = array<i64: 8, 8, 32>}, {pipeline_mode = #tpu.pipeline_mode<synchronous>, transform_indices = @transform_1, window_bounds = array<i64: 32, 16>}, {pipeline_mode = #tpu.pipeline_mode<synchronous>, transform_indices = @transform_2, window_bounds = array<i64: 1, 16>}, {pipeline_mode = #tpu.pipeline_mode<synchronous>, transform_indices = @transform_3, window_bounds = array<i64: 1, 16>}, {transform_indices = @transform_4, window_bounds = array<i64: 8, 32>}]} {
    %c0 = arith.constant 0 : index
    %c0_0 = arith.constant 0 : index
    %c0_1 = arith.constant 0 : index
    %0 = vector.load %arg1[%c0, %c0_0, %c0_1] : memref<8x8x32xf32, #tpu.memory_space<vmem>>, vector<8x8x32xf32>
    %c0_2 = arith.constant 0 : index
    %c0_3 = arith.constant 0 : index
    %1 = vector.load %arg2[%c0_2, %c0_3] : memref<32x16xf32, #tpu.memory_space<vmem>>, vector<32x16xf32>
    %c0_4 = arith.constant 0 : index
    %c0_5 = arith.constant 0 : index
    %2 = vector.load %arg3[%c0_4, %c0_5] : memref<1x16xf32, #tpu.memory_space<vmem>>, vector<1x16xf32>
    %c0_6 = arith.constant 0 : index
    %c0_7 = arith.constant 0 : index
    %3 = vector.load %arg4[%c0_6, %c0_7] : memref<1x16xf32, #tpu.memory_space<vmem>>, vector<1x16xf32>
    %4 = vector.shape_cast %0 : vector<8x8x32xf32> to vector<64x32xf32>
    %cst = arith.constant dense<0.000000e+00> : vector<64x16xf32>
    %5 = tpu.matmul %4, %1, %cst {dimension_numbers = #tpu.dot_dimension_numbers<[1], [0], [0], [1], [0, 0, 1, 1], [], []>} : vector<64x32xf32>, vector<32x16xf32>, vector<64x16xf32> -> vector<64x16xf32>
    %6 = vector.broadcast %2 : vector<1x16xf32> to vector<64x16xf32>
    %7 = arith.addf %5, %6 : vector<64x16xf32>
    %8 = math.tanh %7 : vector<64x16xf32>
    %9 = vector.shape_cast %8 : vector<64x16xf32> to vector<8x8x16xf32>
    %10 = vector.shape_cast %3 : vector<1x16xf32> to vector<1x1x16xf32>
    %11 = vector.broadcast %10 : vector<1x1x16xf32> to vector<8x8x16xf32>
    %12 = arith.mulf %9, %11 : vector<8x8x16xf32>
    %cst_8 = arith.constant dense<0.000000e+00> : vector<8x8xf32>
    %13 = vector.multi_reduction <add>, %12, %cst_8 [2] : vector<8x8x16xf32> to vector<8x8xf32>
    %cst_9 = arith.constant dense<0xFF800000> : vector<8xf32>
    %14 = vector.multi_reduction <maximumf>, %13, %cst_9 [1] : vector<8x8xf32> to vector<8xf32>
    %15 = vector.shape_cast %14 : vector<8xf32> to vector<8x1xf32>
    %16 = vector.broadcast %15 : vector<8x1xf32> to vector<8x8xf32>
    %17 = arith.subf %13, %16 : vector<8x8xf32>
    %18 = math.exp %17 : vector<8x8xf32>
    %cst_10 = arith.constant dense<0.000000e+00> : vector<8xf32>
    %19 = vector.multi_reduction <add>, %18, %cst_10 [1] : vector<8x8xf32> to vector<8xf32>
    %20 = vector.shape_cast %19 : vector<8xf32> to vector<8x1xf32>
    %21 = vector.broadcast %20 : vector<8x1xf32> to vector<8x8xf32>
    %22 = arith.divf %18, %21 : vector<8x8xf32>
    %23 = vector.shape_cast %22 : vector<8x8xf32> to vector<8x8x1xf32>
    %24 = vector.broadcast %23 : vector<8x8x1xf32> to vector<8x8x32xf32>
    %25 = arith.mulf %24, %0 : vector<8x8x32xf32>
    %cst_11 = arith.constant dense<0.000000e+00> : vector<8x32xf32>
    %26 = vector.multi_reduction <add>, %25, %cst_11 [1] : vector<8x8x32xf32> to vector<8x32xf32>
    %c0_12 = arith.constant 0 : index
    %c0_13 = arith.constant 0 : index
    %27 = vector.load %arg5[%c0_12, %c0_13] : memref<8x32xf32, #tpu.memory_space<vmem>>, vector<8x32xf32>
    tpu.vector_store %arg5[%c0_12, %c0_13], %26 {strides = array<i32>} : memref<8x32xf32, #tpu.memory_space<vmem>>, vector<8x32xf32>,
    return
  }
  func.func @transform_0(%arg0: i32) -> (i32, i32, i32) {
    %c0_i32 = arith.constant 0 : i32
    %c0_i32_0 = arith.constant 0 : i32
    %c0_i32_1 = arith.constant 0 : i32
    return %arg0, %c0_i32, %c0_i32_0 : i32, i32, i32
  }
  func.func @transform_1(%arg0: i32) -> (i32, i32) {
    %c0_i32 = arith.constant 0 : i32
    %c0_i32_0 = arith.constant 0 : i32
    %c0_i32_1 = arith.constant 0 : i32
    return %c0_i32, %c0_i32_0 : i32, i32
  }
  func.func @transform_2(%arg0: i32) -> (i32, i32) {
    %c0_i32 = arith.constant 0 : i32
    %c0_i32_0 = arith.constant 0 : i32
    %c0_i32_1 = arith.constant 0 : i32
    return %c0_i32, %c0_i32_0 : i32, i32
  }
  func.func @transform_3(%arg0: i32) -> (i32, i32) {
    %c0_i32 = arith.constant 0 : i32
    %c0_i32_0 = arith.constant 0 : i32
    %c0_i32_1 = arith.constant 0 : i32
    return %c0_i32, %c0_i32_0 : i32, i32
  }
  func.func @transform_4(%arg0: i32) -> (i32, i32) {
    %c0_i32 = arith.constant 0 : i32
    %c0_i32_0 = arith.constant 0 : i32
    return %arg0, %c0_i32 : i32, i32
  }
}

</mosaic_0001>

<bundles_post_ra>
// kernel: tpu_custom_call.1
= control target key start
LH: loop header
LB: loop body
LE: loop exit
PB: predicated region body
PF: predicated region fallthrough
CT: control target
= control target key end

     0   :  { %9 = vsyncpa [#allocation3], 0  ;;  %s1508_s0 = inlined_call_operand.hbm [shape: f32[16,8,32], index: 0, kind: input, shape index: {}]   ;;  %s1509_s1 = inlined_call_operand.vmem [shape: f32[32,16], index: 1, kind: input, shape index: {}]   ;;  %s1510_s2 = inlined_call_operand.vmem [shape: f32[1,16], index: 2, kind: input, shape index: {}]   ;;  %s1511_s3 = inlined_call_operand.vmem [shape: f32[1,16], index: 3, kind: input, shape index: {}]   ;;  %s1512_s4 = inlined_call_operand.hbm [shape: f32[16,32], index: 4, kind: output, shape index: {}]  }
   0x1   :  { %11 = vsyncpa [#allocation3 + $0x1], 0 }
   0x2   :  { %12 = vsyncpa [#allocation4], 0 }
   0x3   :  { %14 = vsyncpa [#allocation4 + $0x1], 0  ;;  %s1164_s15 = smov 0   ;;  %s1166_s16 = smov 0  }
   0x4   :  { %s1168_s17 = smov 0   ;;  %s1170_s18 = smov 0  }
   0x5 LB: > { %s1185_s19 = sadd.s32 4294967295, %s1132_s18   ;;  %s877_s20 = sadd.s32 4294967294, %s1132_s18   ;;  %s1132_s18 = sphi %s1170_s18, %s1527_s18   ;;  %s1128_s17 = sphi %s1168_s17, %s1526_s17   ;;  %s1124_s16 = sphi %s1166_s16, %s1525_s16   ;;  %s1120_s15 = sphi %s1164_s15, %s1524_s15  }
   0x6   : > { %s1189_s21 = sadd.s32 1, %s1132_s18   ;;  %s27_s22 = sadd.s32 1, %s1128_s17 }
   0x7   : > { %s24_s23 = ssub.s32 %s1132_s18, %s1189_s21  ;;  %p34_p0 = scmp.ne.s32.totalorder %s1128_s17, %s1124_s16 }
   0x8   : > { %p25_p1 = scmp.eq.s32.totalorder %s24_s23, 0  ;;  %p35_p2 = scmp.eq.s32.totalorder %s1132_s18, 0 }
   0x9   : > { %p40_p3 = scmp.ne.s32.totalorder %s1124_s16, %s1120_s15  ;;  %p41_p4 = scmp.eq.s32.totalorder %s1185_s19, 0 }
   0xa   : > { %s1201_s24 = scalar_select %p25_p1, %s1128_s17, %s27_s22  }
   0xb   : > { %p1203_p5 = por %p35_p2, %p34_p0  ;;  %p1207_p6 = por %p41_p4, %p40_p3 }
   0xc   : > { %p127_p7 = scmp.eq.s32.totalorder %s1185_s19, 1  ;;  %p133_p8 = scmp.eq.s32.totalorder %s877_s20, 1 }
   0xd   : > { %s1516_s26 = scalar_select %p1207_p6, 1, 0 }
   0xe   : > { %p953_p10 = scmp.lt.s32.totalorder %s1132_s18, 2  ;;  %p1214_p11 = por %p127_p7, %p34_p0 }
   0xf   : > { %p1218_p12 = por %p133_p8, %p40_p3  ;;  %s162_s29 = sand.u32 1, %s1128_s17  }
  0x10   : > { %s1517_s27 = scalar_select %p1214_p11, 1, 0 }
  0x11   : > { %s1518_s28 = scalar_select %p1218_p12, 1, 0 }
  0x12   : > { %s900_s30 = sshll.u32 %s1132_s18, 10  ;;  %s880_s5 = sshll.u32 %s162_s29, 6 }
  0x13   : > { %s1227_s8 = scalar_lea.hbm %s1508_s0, %s900_s30  ;;  %s166_s9 = scalar_lea.vmem [#allocation2], %s880_s5 }
  0x14   : > { %s173_s10 = sshll.u32 %s166_s9, 4  ;;  %p1231_p13 = pnand %p953_p10, %p1203_p5  ;;  %s1235_s10 = int_to_ptr.vmem [resolvable:$true] %s173_s10 }
  0x15   : > { %s1237_s12 = scalar_lea.sflag [#allocation3], %s162_s29  ;;  %s1040_s13 = scalar_lea.hbm %s1227_s8, 1024 }
  0x16   : > { %p1041_p0 = scmp.ne.s32.totalorder %s1227_s8, %s1040_s13  ;;  %p1042_p1 = pneg %p1231_p13 }
  0x17   : > { %s1045_s22 = scalar_lea.hbm %s1508_s0, 2048  ;;  %p1046_p4 = scmp.lt.s32.totalorder %s1227_s8, %s1508_s0 }
  0x18   : > { %p1043_p2 = pnand %p1042_p1, %p1041_p0  ;;  %p1047_p5 = scmp.lt.s32.totalorder %s1045_s22, %s1040_s13 }
  0x1a   : > { %p1044_p3 = pneg %p1043_p2  ;;  %p1048_p7 = por %p1047_p5, %p1046_p4 }
  0x1c   : > { %p1049_p8 = pnand %p1048_p7, %p1044_p3 }
  0x1e   : > { %1052 = shalt.err (!%p1049_p8)
}
  0x1f   : > { %s1053_s29 = scalar_lea.vmem %s1235_s10, 1024  ;;  %s1134_s30 = smov [#allocation2]  }
  0x20   : > { %p1054_p10 = scmp.ne.s32.totalorder %s1235_s10, %s1053_s29  ;;  %s1058_s5 = sshll.u32 %s1134_s30, 4  ;;  %s1059_s5 = int_to_ptr.vmem [resolvable:$false] %s1058_s5 }
  0x21   : > { %s1060_s6 = scalar_lea.vmem %s1059_s5, 2048  ;;  %p1061_p2 = scmp.lt.s32.totalorder %s1235_s10, %s1059_s5 }
  0x22   : > { %p1056_p9 = pnand %p1054_p10, %p1042_p1  ;;  %p1062_p12 = scmp.lt.s32.totalorder %s1060_s6, %s1053_s29 }
  0x24   : > { %p1057_p0 = pneg %p1056_p9  ;;  %p1063_p11 = por %p1062_p12, %p1061_p2 }
  0x26   : > { %p1064_p6 = pnand %p1063_p11, %p1057_p0 }
  0x28   : > { %1067 = shalt.err (!%p1064_p6)
}
  0x29   : > { %s1135_s7 = smov 128   ;;  %s1136_s9 = smov 8  }
  0x2a   : > { %948 = dma.hbm_to_vmem [thread:$0]  (!%p1231_p13), %s1227_s8, 1024, %s1235_s10, %s1237_s12, %s1135_s7, %s1135_s7, %s1136_s9  }
  0x2b   : > { %p883_p9 = scmp.ge.s32.totalorder %s1132_s18, 1  ;;  %p181_p1 = scmp.lt.s32.totalorder %s1132_s18, 3 }
  0x2d   : > { %p182_p3 = pnand %p883_p9, %p181_p1 }
  0x2e   : > { %s1261_s13 = sand.u32 (!%p182_p3), 1, %s1124_s16   ;;  %p1520_p6 = scmp.ne.s32.totalorder (!%p182_p3), %s1516_s26, 0 }
  0x2f   : > { %185 = sbr.rel (%p182_p3) target bundleno = 1079 (0x437), region = 36  ;;  %s884_s14 = sshll.u32 (!%p182_p3), %s1261_s13, 6 }
  0x30   : > { %s188_s20 = scalar_lea.sflag (!%p182_p3), [#allocation3], %s1261_s13  ;;  %s1265_s22 = scalar_lea.vmem (!%p182_p3), [#allocation2], %s884_s14 }
  0x34   : > { %1111 = dma.done.wait (%p1520_p6), %s188_s20, 1024  }
  0x35   : > { %1113 = vsyncadd (%p1520_p6), %s188_s20, 4294966272  ;;  %vm237_vm0 = vcmask 261120   ;;  %v228_v0 = vld [vmem:[%s1509_s1 + $0x18] sm:$0xff]  ;;  %v227_v1 = vld [vmem:[%s1509_s1 + $0x10] sm:$0xff]  ;;  %vm389_vm1 = vcmask 130048   ;;  %v422_v54 = vlaneseq  ;;  %vm456_vm2 = vcmask 1041409  }
  0x36   : > { %913 = vmatprep.subr.mxu0 %v228_v0  ;;  %933 = vmatprep.subr.mxu1 %v228_v0  ;;  %v1278_v2 = vld [vmem:[%s1265_s22] sm:$0xff]  ;;  %v226_v3 = vld [vmem:[%s1509_s1 + $0x8] sm:$0xff]  ;;  %v1292_v6 = vld [vmem:[%s1265_s22 + $0x10] sm:$0xff]  ;;  %vm458_vm3 = vcmask 1042434   ;;  %vm460_vm4 = vcmask 1043459   ;;  %vm462_vm5 = vcmask 1044484  }
  0x37   : > { %914 = vmatpush3.msra.mxu0 %v228_v0  ;;  %921 = vmatprep.mubr.msk.f32.mxu0 %vm237_vm0, %v1278_v2  ;;  %v225_v4 = vld [vmem:[%s1509_s1] sm:$0xff]  ;;  %v1289_v5 = vld [vmem:[%s1265_s22 + $0x8] sm:$0xff]  ;;  %v1303_v9 = vld [vmem:[%s1265_s22 + $0x30] sm:$0xff]  ;;  %v423_v55 = vand.u32 127, %v422_v54  ;;  %v1337_v56 = vshrl.u32 %v422_v54, 7  ;;  %vm464_vm6 = vcmask 1045509  }
  0x38   : > { %915 = vmatprep.subr.mxu0 %v227_v1  ;;  %937 = vmatpush3.msra.mxu1 %v228_v0  ;;  %v1295_v7 = vld [vmem:[%s1265_s22 + $0x20] sm:$0xff]  ;;  %v1298_v8 = vld [vmem:[%s1265_s22 + $0x28] sm:$0xff]  ;;  %v1308_v10 = vld [vmem:[%s1265_s22 + $0x18] sm:$0xff]  ;;  %vm466_vm7 = vcmask 1046534   ;;  %vm468_vm8 = vcmask 1047559   ;;  %vm471_vm9 = vcmask 64512  }
  0x39   : > { %916 = vmatpush3.msra.mxu0 %v227_v1  ;;  %934 = vmatprep.subr.mxu1 %v227_v1  ;;  %v1317_v11 = vld [vmem:[%s1265_s22 + $0x38] sm:$0xff]  ;;  %v886_v12 = vld [vmem:[%s1510_s2] ss:$0 sm:$0xff]  ;;  %v1340_v58 = vsub.s32 %v423_v55, %v1337_v56  ;;  %s885_s9 = sshll.u32 %s1261_s13, 3  ;;  %s897_s14 = sshll.u32 %s1185_s19, 7 }
  0x3a   : > { %917 = vmatprep.subr.mxu0 %v226_v3  ;;  %938 = vmatpush3.msra.mxu1 %v227_v1  ;;  %v895_v29 = vld [vmem:[%s1511_s3] ss:$0 sm:$0xff]  ;;  %s215_s20 = scalar_lea.vmem [#allocation5], %s885_s9  ;;  %s1469_s11 = scalar_lea.hbm %s1512_s4, %s897_s14 }
  0x3b   : > { %918 = vmatpush3.msra.mxu0 %v226_v3  ;;  %935 = vmatprep.subr.mxu1 %v226_v3  ;;  %s807_s22 = sshll.u32 %s215_s20, 4  ;;  %s794_s19 = scalar_lea.sflag [#allocation4], %s1261_s13  ;;  %s808_s22 = int_to_ptr.vmem [resolvable:$true] %s807_s22 }
  0x3c   : > { %919 = vmatprep.subr.mxu0 %v225_v4  ;;  %939 = vmatpush3.msra.mxu1 %v226_v3  ;;  %s1068_s12 = scalar_lea.vmem %s808_s22, 128  ;;  %p1521_p12 = scmp.ne.s32.totalorder %s1517_s27, 0 }
  0x3d   : > { %920 = vmatpush3.msra.mxu0 %v225_v4  ;;  %936 = vmatprep.subr.mxu1 %v225_v4  ;;  %p1069_p11 = scmp.ne.s32.totalorder %s808_s22, %s1068_s12  ;;  %s1138_s23 = smov [#allocation5]  }
  0x3e   : > { %922 = vmatmul.mubr.msk.f32.vlgmr.msra.gmra.mxu0 %vm237_vm0, %v1289_v5  ;;  %940 = vmatpush3.msra.mxu1 %v225_v4  ;;  %s1072_s26 = sshll.u32 %s1138_s23, 4  ;;  %s1073_s26 = int_to_ptr.vmem [resolvable:$false] %s1072_s26 }
  0x3f   : > { %924 = vmatprep.mubr.msk.f32.mxu0 %vm237_vm0, %v1292_v6  ;;  %927 = vmatprep.mubr.msk.f32.mxu1 %vm237_vm0, %v1295_v7  ;;  %p1070_p13 = pnand %p1069_p11, %p1521_p12  ;;  %s1074_s25 = scalar_lea.vmem %s1073_s26, 256 }
  0x40   : > { %928 = vmatmul.mubr.msk.f32.vlgmr.msra.gmra.mxu1 %vm237_vm0, %v1298_v8  ;;  %p1075_p5 = scmp.lt.s32.totalorder %s808_s22, %s1073_s26  ;;  %p1076_p7 = scmp.lt.s32.totalorder %s1074_s25, %s1068_s12 }
  0x41   : > { %930 = vmatprep.mubr.msk.f32.mxu1 %vm237_vm0, %v1303_v9  ;;  %p1071_p4 = pneg %p1070_p13 }
  0x42   : > { %925 = vmatmul.mubr.msk.f32.gmra.mxu0 %vm237_vm0, %v1308_v10  ;;  %p1077_p8 = por %p1076_p7, %p1075_p5 }
  0x44   : > { %931 = vmatmul.mubr.msk.f32.gmra.mxu1 %vm237_vm0, %v1317_v11  ;;  %p1078_p10 = pnand %p1077_p8, %p1071_p4 }
  0xfe   : > { %v923_v13 = vpop.f32.mrf.mxu0 }
  0xff   : > { %v334_v14 = vadd.f32 %v923_v13, %v886_v12 }
 0x100   : > { %v328_v15 = vpop.f32.mrf.mxu0  ;;  %v929_v16 = vpop.f32.mrf.mxu1 }
 0x101   : > { %992 = vtanh.f32 %v334_v14  ;;  %v329_v17 = vadd.f32 %v886_v12, %v328_v15  ;;  %v354_v23 = vadd.f32 %v929_v16, %v886_v12 }
 0x102   : > { %v926_v18 = vpop.f32.mrf.mxu0  ;;  %v348_v19 = vpop.f32.mrf.mxu1 }
 0x103   : > { %994 = vtanh.f32 %v329_v17  ;;  %v344_v20 = vadd.f32 %v926_v18, %v886_v12  ;;  %v349_v21 = vadd.f32 %v886_v12, %v348_v19 }
 0x104   : > { %v338_v22 = vpop.f32.mrf.mxu0  ;;  %v932_v24 = vpop.f32.mrf.mxu1 }
 0x105   : > { %996 = vtanh.f32 %v344_v20  ;;  %v339_v25 = vadd.f32 %v886_v12, %v338_v22  ;;  %v364_v28 = vadd.f32 %v932_v24, %v886_v12 }
 0x106   : > { %998 = vtanh.f32 %v349_v21  ;;  %v358_v26 = vpop.f32.mrf.mxu1 }
 0x107   : > { %1000 = vtanh.f32 %v339_v25  ;;  %v359_v27 = vadd.f32 %v886_v12, %v358_v26  ;;  %v1137_v26 = vmov 0  }
 0x108   : > { %1002 = vtanh.f32 %v354_v23  ;;  %991 = vset.pattern.permute.xlu0 %v1137_v26  ;;  %990 = vset.pattern.permute.xlu1 %v1137_v26 }
 0x109   : > { %1004 = vtanh.f32 %v359_v27  ;;  %v478_v27 = vsub.s32 0, %v1337_v56 }
 0x10a   : > { %1006 = vtanh.f32 %v364_v28  ;;  %v482_v28 = vsub.s32 1, %v1337_v56 }
 0x10e   : > { %v993_v30 = vpop.eup %992 }
 0x10f   : > { %v382_v31 = vmul.f32 %v993_v30, %v895_v29  ;;  %v490_v30 = vsub.s32 3, %v1337_v56 }
 0x110   : > { %v995_v32 = vpop.eup %994 }
 0x111   : > { %v393_v33 = vsel %vm389_vm1, %v382_v31, 0.0  ;;  %v381_v34 = vmul.f32 %v995_v32, %v895_v29 }
 0x112   : > { %v997_v35 = vpop.eup %996  ;;  %394 = vadd.xlane.f32.xlu0 %v393_v33 }
 0x113   : > { %v999_v36 = vpop.eup %998  ;;  %v384_v37 = vmul.f32 %v997_v35, %v895_v29  ;;  %v390_v42 = vsel %vm389_vm1, %v381_v34, 0.0  ;;  %v494_v35 = vsub.s32 4, %v1337_v56 }
 0x114   : > { %v1001_v38 = vpop.eup %1000  ;;  %v385_v39 = vmul.f32 %v999_v36, %v895_v29 }
 0x115   : > { %v1003_v40 = vpop.eup %1002  ;;  %v399_v41 = vsel %vm389_vm1, %v384_v37, 0.0  ;;  %v383_v43 = vmul.f32 %v1001_v38, %v895_v29 }
 0x116   : > { %v1005_v44 = vpop.eup %1004  ;;  %400 = vadd.xlane.f32.xlu1 %v399_v41  ;;  %391 = vadd.xlane.f32.xlu0 %v390_v42  ;;  %v402_v45 = vsel %vm389_vm1, %v385_v39, 0.0  ;;  %v386_v48 = vmul.f32 %v1003_v40, %v895_v29  ;;  %v498_v42 = vsub.s32 5, %v1337_v56 }
 0x117   : > { %v387_v46 = vmul.f32 %v1005_v44, %v895_v29  ;;  %v396_v47 = vsel %vm389_vm1, %v383_v43, 0.0  ;;  %v1007_v49 = vpop.eup %1006 }
 0x118   : > { %v405_v51 = vsel %vm389_vm1, %v386_v48, 0.0  ;;  %v388_v52 = vmul.f32 %v1007_v49, %v895_v29  ;;  %v486_v29 = vsub.s32 2, %v1337_v56 }
 0x119   : > { %v408_v50 = vsel %vm389_vm1, %v387_v46, 0.0  ;;  %v502_v46 = vsub.s32 6, %v1337_v56 }
 0x11a   : > { %397 = vadd.xlane.f32.xlu1 %v396_v47  ;;  %403 = vadd.xlane.f32.xlu0 %v402_v45  ;;  %v411_v53 = vsel %vm389_vm1, %v388_v52, 0.0 }
 0x11e   : > { %406 = vadd.xlane.f32.xlu1 %v405_v51  ;;  %409 = vadd.xlane.f32.xlu0 %v408_v50  ;;  %v506_v50 = vsub.s32 7, %v1337_v56 }
 0x122   : > { %412 = vadd.xlane.f32.xlu1 %v411_v53 }
 0x19b   : > { %v395_v57 = vpop.xlane.xlu0 %394 }
 0x19c   : > { %v431_v62 = vrot.slane %v395_v57, %v1340_v58 }
 0x19f   : > { %v401_v59 = vpop.xlane.xlu1 %400  ;;  %v392_v60 = vpop.xlane.xlu0 %391 }
 0x1a0   : > { %v427_v61 = vrot.slane %v392_v60, %v1340_v58  ;;  %v439_v4 = vrot.slane %v401_v59, %v1340_v58 }
 0x1a2   : > { %v457_v12 = vsel %vm456_vm2, %v431_v62, %v427_v61 }
 0x1a3   : > { %v398_v63 = vpop.xlane.xlu1 %397  ;;  %v404_v0 = vpop.xlane.xlu0 %403 }
 0x1a4   : > { %v435_v1 = vrot.slane %v398_v63, %v1340_v58  ;;  %v443_v3 = vrot.slane %v404_v0, %v1340_v58 }
 0x1a6   : > { %v459_v13 = vsel %vm458_vm3, %v435_v1, %v457_v12 }
 0x1a7   : > { %v461_v14 = vsel %vm460_vm4, %v439_v4, %v459_v13  ;;  %v407_v15 = vpop.xlane.xlu1 %406  ;;  %v410_v16 = vpop.xlane.xlu0 %409 }
 0x1a8   : > { %v463_v17 = vsel %vm462_vm5, %v443_v3, %v461_v14  ;;  %v447_v18 = vrot.slane %v407_v15, %v1340_v58  ;;  %v451_v19 = vrot.slane %v410_v16, %v1340_v58 }
 0x1aa   : > { %v465_v20 = vsel %vm464_vm6, %v447_v18, %v463_v17 }
 0x1ab   : > { %v413_v21 = vpop.xlane.xlu1 %412  ;;  %v467_v23 = vsel %vm466_vm7, %v451_v19, %v465_v20 }
 0x1ac   : > { %v455_v22 = vrot.slane %v413_v21, %v1340_v58 }
 0x1ae   : > { %v469_v24 = vsel %vm468_vm8, %v455_v22, %v467_v23 }
 0x1af   : > { %v472_v25 = vsel %vm471_vm9, %v469_v24, -inf }
 0x1b0   : > { %473 = vmax.xlane.f32.xlu0 %v472_v25 }
 0x239   : > { %v474_v31 = vpop.xlane.xlu0 %473 }
 0x23a   : > { %v479_v32 = vrot.slane %v474_v31, %v478_v27  ;;  %v483_v33 = vrot.slane %v474_v31, %v482_v28  ;;  %v487_v34 = vrot.slane %v474_v31, %v486_v29  ;;  %v491_v36 = vrot.slane %v474_v31, %v490_v30 }
 0x23b   : > { %v495_v43 = vrot.slane %v474_v31, %v494_v35  ;;  %v499_v47 = vrot.slane %v474_v31, %v498_v42  ;;  %v503_v51 = vrot.slane %v474_v31, %v502_v46  ;;  %v507_v54 = vrot.slane %v474_v31, %v506_v50 }
 0x23c   : > { %v516_v37 = vsub.f32 %v392_v60, %v479_v32  ;;  %v517_v38 = vsub.f32 %v395_v57, %v483_v33  ;;  %v518_v39 = vsub.f32 %v398_v63, %v487_v34  ;;  %v519_v44 = vsub.f32 %v401_v59, %v491_v36 }
 0x23d   : > { %v520_v48 = vsub.f32 %v404_v0, %v495_v43  ;;  %v521_v52 = vsub.f32 %v407_v15, %v499_v47  ;;  %v522_v55 = vsub.f32 %v410_v16, %v503_v51  ;;  %v523_v61 = vsub.f32 %v413_v21, %v507_v54 }
 0x23e   : > { %v524_v40 = vmul.f32 1.442695, %v516_v37  ;;  %v526_v41 = vmul.f32 1.442695, %v517_v38  ;;  %v528_v45 = vmul.f32 1.442695, %v518_v39 }
 0x23f   : > { %v530_v49 = vmul.f32 1.442695, %v519_v44  ;;  %v532_v53 = vmul.f32 1.442695, %v520_v48  ;;  %v534_v57 = vmul.f32 1.442695, %v521_v52 }
 0x240   : > { %1008 = vpow2.f32 %v524_v40  ;;  %v536_v62 = vmul.f32 1.442695, %v522_v55  ;;  %v538_v0 = vmul.f32 1.442695, %v523_v61 }
 0x241   : > { %1010 = vpow2.f32 %v526_v41 }
 0x242   : > { %1012 = vpow2.f32 %v528_v45 }
 0x243   : > { %1014 = vpow2.f32 %v530_v49 }
 0x244   : > { %1016 = vpow2.f32 %v532_v53 }
 0x245   : > { %1018 = vpow2.f32 %v534_v57 }
 0x246   : > { %1020 = vpow2.f32 %v536_v62 }
 0x247   : > { %1022 = vpow2.f32 %v538_v0 }
 0x24d   : > { %v1009_v59 = vpop.eup %1008 }
 0x24e   : > { %v1382_v60 = vpop.eup %1010  ;;  %549 = vperm.xlu1 %990, %v1009_v59  }
 0x24f   : > { %552 = vperm.xlu0 %991, %v1382_v60   ;;  %v1385_v63 = vpop.eup %1012 }
 0x250   : > { %v1388_v1 = vpop.eup %1014 }
 0x251   : > { %v1391_v3 = vpop.eup %1016 }
 0x252   : > { %555 = vperm.xlu1 %990, %v1385_v63   ;;  %v1394_v4 = vpop.eup %1018 }
 0x253   : > { %v1397_v12 = vpop.eup %1020 }
 0x254   : > { %v1400_v13 = vpop.eup %1022 }
 0x256   : > { %558 = vperm.xlu1 %990, %v1388_v1  }
 0x25a   : > { %561 = vperm.xlu1 %990, %v1391_v3  }
 0x25e   : > { %564 = vperm.xlu1 %990, %v1394_v4  }
 0x262   : > { %567 = vperm.xlu1 %990, %v1397_v12  }
 0x266   : > { %570 = vperm.xlu1 %990, %v1400_v13  }
 0x2c9   : > { %v550_v14 = vpop.permute.xlu1 %549 }
 0x2ca   : > { %v553_v18 = vpop.permute.xlu0 %552  ;;  %v575_v21 = vrot.slane %v550_v14, %v1340_v58 }
 0x2cb   : > { %v579_v20 = vrot.slane %v553_v18, %v1340_v58 }
 0x2cd   : > { %v556_v15 = vpop.permute.xlu1 %555  ;;  %v604_v26 = vsel %vm456_vm2, %v579_v20, %v575_v21 }
 0x2ce   : > { %v583_v22 = vrot.slane %v556_v15, %v1340_v58 }
 0x2d0   : > { %v605_v32 = vsel %vm458_vm3, %v583_v22, %v604_v26 }
 0x2d1   : > { %v559_v16 = vpop.permute.xlu1 %558 }
 0x2d2   : > { %v587_v23 = vrot.slane %v559_v16, %v1340_v58 }
 0x2d4   : > { %v606_v34 = vsel %vm460_vm4, %v587_v23, %v605_v32 }
 0x2d5   : > { %v562_v17 = vpop.permute.xlu1 %561 }
 0x2d6   : > { %v591_v24 = vrot.slane %v562_v17, %v1340_v58 }
 0x2d8   : > { %v607_v36 = vsel %vm462_vm5, %v591_v24, %v606_v34 }
 0x2d9   : > { %v565_v19 = vpop.permute.xlu1 %564 }
 0x2da   : > { %v595_v31 = vrot.slane %v565_v19, %v1340_v58 }
 0x2dc   : > { %v608_v38 = vsel %vm464_vm6, %v595_v31, %v607_v36 }
 0x2dd   : > { %v568_v25 = vpop.permute.xlu1 %567 }
 0x2de   : > { %v599_v33 = vrot.slane %v568_v25, %v1340_v58 }
 0x2e0   : > { %v609_v40 = vsel %vm466_vm7, %v599_v33, %v608_v38 }
 0x2e1   : > { %v571_v37 = vpop.permute.xlu1 %570 }
 0x2e2   : > { %v603_v39 = vrot.slane %v571_v37, %v1340_v58 }
 0x2e4   : > { %v610_v41 = vsel %vm468_vm8, %v603_v39, %v609_v40 }
 0x2e5   : > { %v612_v43 = vsel %vm471_vm9, %v610_v41, 0.0 }
 0x2e6   : > { %613 = vadd.xlane.f32.xlu1 %v612_v43 }
 0x36f   : > { %v614_v44 = vpop.xlane.xlu1 %613 }
 0x370   : > { %v619_v45 = vrot.slane %v614_v44, %v478_v27  ;;  %v623_v47 = vrot.slane %v614_v44, %v482_v28  ;;  %v627_v48 = vrot.slane %v614_v44, %v486_v29  ;;  %v631_v58 = vrot.slane %v614_v44, %v490_v30 }
 0x371   : > { %v635_v49 = vrot.slane %v614_v44, %v494_v35  ;;  %v639_v27 = vrot.slane %v614_v44, %v498_v42  ;;  %v643_v29 = vrot.slane %v614_v44, %v502_v46  ;;  %v647_v35 = vrot.slane %v614_v44, %v506_v50 }
 0x372   : > { %1024 = vrcp.f32 %v619_v45 }
 0x373   : > { %1026 = vrcp.f32 %v623_v47 }
 0x374   : > { %1028 = vrcp.f32 %v627_v48 }
 0x375   : > { %1030 = vrcp.f32 %v631_v58 }
 0x376   : > { %1032 = vrcp.f32 %v635_v49 }
 0x377   : > { %1034 = vrcp.f32 %v639_v27 }
 0x378   : > { %1036 = vrcp.f32 %v643_v29 }
 0x379   : > { %1038 = vrcp.f32 %v647_v35 }
 0x37f   : > { %v1025_v51 = vpop.eup %1024 }
 0x380   : > { %v657_v52 = vmul.f32 %v1025_v51, %v1009_v59  ;;  %v1027_v28 = vpop.eup %1026 }
 0x381   : > { %v659_v53 = vmul.f32 %v1027_v28, %v1382_v60  ;;  %v1029_v30 = vpop.eup %1028 }
 0x382   : > { %674 = vperm.xlu0 %991, %v657_v52   ;;  %v661_v54 = vmul.f32 %v1029_v30, %v1385_v63  ;;  %v1031_v55 = vpop.eup %1030 }
 0x383   : > { %v663_v42 = vmul.f32 %v1031_v55, %v1388_v1  ;;  %v1033_v57 = vpop.eup %1032 }
 0x384   : > { %v665_v46 = vmul.f32 %v1033_v57, %v1391_v3  ;;  %v1035_v59 = vpop.eup %1034 }
 0x385   : > { %v667_v60 = vmul.f32 %v1035_v59, %v1394_v4  ;;  %v1037_v61 = vpop.eup %1036 }
 0x386   : > { %679 = vperm.xlu0 %991, %v659_v53   ;;  %v669_v56 = vmul.f32 %v1037_v61, %v1397_v12  ;;  %v1039_v50 = vpop.eup %1038 }
 0x387   : > { %v671_v62 = vmul.f32 %v1039_v50, %v1400_v13 }
 0x38a   : > { %684 = vperm.xlu0 %991, %v661_v54  }
 0x38e   : > { %689 = vperm.xlu0 %991, %v663_v42  }
 0x392   : > { %694 = vperm.xlu0 %991, %v665_v46  }
 0x396   : > { %699 = vperm.xlu0 %991, %v667_v60  }
 0x39a   : > { %704 = vperm.xlu0 %991, %v669_v56  }
 0x39e   : > { %709 = vperm.xlu0 %991, %v671_v62  }
 0x3fd   : > { %v675_v63 = vpop.permute.xlu0 %674 }
 0x3fe   : > { %v712_v3 = vmul.f32 %v675_v63, %v1278_v2 }
 0x400   : > { %v720_v12 = vsel %vm237_vm0, %v712_v3, 0.0 }
 0x401   : > { %v680_v0 = vpop.permute.xlu0 %679  ;;  %v721_v21 = vrot.slane %v720_v12, 4 }
 0x402   : > { %v713_v1 = vmul.f32 %v680_v0, %v1289_v5 }
 0x403   : > { %v722_v25 = vadd.f32 %v721_v21, %v720_v12 }
 0x404   : > { %v727_v4 = vsel %vm237_vm0, %v713_v1, 0.0 }
 0x405   : > { %v685_v14 = vpop.permute.xlu0 %684  ;;  %v728_v13 = vrot.slane %v727_v4, 4  ;;  %v723_v38 = vrot.slane %v722_v25, 2 }
 0x406   : > { %v714_v15 = vmul.f32 %v685_v14, %v1292_v6 }
 0x407   : > { %v729_v23 = vadd.f32 %v728_v13, %v727_v4  ;;  %v724_v58 = vadd.f32 %v723_v38, %v722_v25 }
 0x408   : > { %v734_v16 = vsel %vm237_vm0, %v714_v15, 0.0 }
 0x409   : > { %v690_v17 = vpop.permute.xlu0 %689  ;;  %v735_v19 = vrot.slane %v734_v16, 4  ;;  %v725_v54 = vrot.slane %v724_v58, 1 }
 0x40a   : > { %v715_v18 = vmul.f32 %v690_v17, %v1308_v10  ;;  %v730_v10 = vrot.slane %v729_v23, 2 }
 0x40b   : > { %v736_v6 = vadd.f32 %v735_v19, %v734_v16  ;;  %v726_v62 = vadd.f32 %v725_v54, %v724_v58 }
 0x40c   : > { %v741_v20 = vsel %vm237_vm0, %v715_v18, 0.0  ;;  %v731_v44 = vadd.f32 %v730_v10, %v729_v23 }
 0x40d   : > { %v742_v5 = vrot.slane %v741_v20, 4  ;;  %v695_v22 = vpop.permute.xlu0 %694  ;;  %v737_v36 = vrot.slane %v736_v6, 2 }
 0x40e   : > { %v716_v2 = vmul.f32 %v695_v22, %v1295_v7  ;;  %v732_v29 = vrot.slane %v731_v44, 1 }
 0x40f   : > { %v743_v26 = vadd.f32 %v742_v5, %v741_v20  ;;  %v738_v47 = vadd.f32 %v737_v36, %v736_v6 }
 0x410   : > { %v748_v24 = vsel %vm237_vm0, %v716_v2, 0.0  ;;  %v733_v59 = vadd.f32 %v732_v29, %v731_v44 }
 0x411   : > { %v749_v31 = vrot.slane %v748_v24, 4  ;;  %v700_v32 = vpop.permute.xlu0 %699  ;;  %v744_v39 = vrot.slane %v743_v26, 2  ;;  %v739_v35 = vrot.slane %v738_v47, 1 }
 0x412   : > { %v717_v33 = vmul.f32 %v700_v32, %v1298_v8  ;;  %v784_v14 = vsel %vm456_vm2, %v733_v59, %v726_v62 }
 0x413   : > { %v750_v34 = vadd.f32 %v749_v31, %v748_v24  ;;  %v745_v49 = vadd.f32 %v744_v39, %v743_v26  ;;  %v740_v50 = vadd.f32 %v739_v35, %v738_v47 }
 0x414   : > { %v755_v37 = vsel %vm237_vm0, %v717_v33, 0.0 }
 0x415   : > { %v756_v40 = vrot.slane %v755_v37, 4  ;;  %v705_v41 = vpop.permute.xlu0 %704  ;;  %v751_v7 = vrot.slane %v750_v34, 2  ;;  %v746_v55 = vrot.slane %v745_v49, 1  ;;  %v785_v4 = vsel %vm458_vm3, %v740_v50, %v784_v14 }
 0x416   : > { %v718_v43 = vmul.f32 %v705_v41, %v1303_v9 }
 0x417   : > { %v757_v45 = vadd.f32 %v756_v40, %v755_v37  ;;  %v752_v52 = vadd.f32 %v751_v7, %v750_v34 }
 0x418   : > { %v762_v48 = vsel %vm237_vm0, %v718_v43, 0.0 }
 0x419   : > { %v758_v8 = vrot.slane %v757_v45, 2  ;;  %v763_v51 = vrot.slane %v762_v48, 4  ;;  %v710_v27 = vpop.permute.xlu0 %709  ;;  %v753_v46 = vrot.slane %v752_v52, 1 }
 0x41a   : > { %v719_v28 = vmul.f32 %v710_v27, %v1317_v11  ;;  %v747_v11 = vadd.f32 %v746_v55, %v745_v49 }
 0x41b   : > { %v759_v53 = vadd.f32 %v758_v8, %v757_v45  ;;  %v764_v30 = vadd.f32 %v763_v51, %v762_v48  ;;  %v754_v1 = vadd.f32 %v753_v46, %v752_v52 }
 0x41c   : > { %v769_v9 = vsel %vm237_vm0, %v719_v28, 0.0  ;;  %v786_v17 = vsel %vm460_vm4, %v747_v11, %v785_v4 }
 0x41d   : > { %v765_v42 = vrot.slane %v764_v30, 2  ;;  %v770_v57 = vrot.slane %v769_v9, 4  ;;  %v760_v60 = vrot.slane %v759_v53, 1  ;;  %v787_v18 = vsel %vm462_vm5, %v754_v1, %v786_v17 }
 0x41f   : > { %v766_v61 = vadd.f32 %v765_v42, %v764_v30  ;;  %v771_v56 = vadd.f32 %v770_v57, %v769_v9  ;;  %v761_v3 = vadd.f32 %v760_v60, %v759_v53 }
 0x421   : > { %v767_v63 = vrot.slane %v766_v61, 1  ;;  %v772_v0 = vrot.slane %v771_v56, 2  ;;  %v788_v13 = vsel %vm464_vm6, %v761_v3, %v787_v18 }
 0x423   : > { %v773_v15 = vadd.f32 %v772_v0, %v771_v56  ;;  %v768_v16 = vadd.f32 %v767_v63, %v766_v61 }
 0x425   : > { %v774_v12 = vrot.slane %v773_v15, 1  ;;  %v789_v20 = vsel %vm466_vm7, %v768_v16, %v788_v13 }
 0x427   : > { %v775_v19 = vadd.f32 %v774_v12, %v773_v15 }
 0x429   : > { %v790_v21 = vsel %vm468_vm8, %v775_v19, %v789_v20 }
 0x42a   : > { %792 = vst.msk [vmem:[%s215_s20] sm:$0xff] %vm237_vm0, %v790_v21 }
 0x42b   : > { %1081 = shalt.err (!%p1078_p10)
}
 0x42c   : > { %s1082_s29 = scalar_lea.hbm %s1469_s11, 128  ;;  %s1086_s5 = scalar_lea.hbm %s1512_s4, 256 }
 0x42d   : > { %p1083_p0 = scmp.ne.s32.totalorder %s1469_s11, %s1082_s29  ;;  %p1087_p1 = scmp.lt.s32.totalorder %s1469_s11, %s1512_s4 }
 0x42e   : > { %p1088_p3 = scmp.lt.s32.totalorder %s1086_s5, %s1082_s29 }
 0x42f   : > { %p1084_p2 = pnand %p1083_p0, %p1521_p12 }
 0x430   : > { %p1089_p6 = por %p1088_p3, %p1087_p1 }
 0x431   : > { %p1085_p9 = pneg %p1084_p2 }
 0x433   : > { %p1090_p11 = pnand %p1089_p6, %p1085_p9 }
 0x435   : > { %1093 = shalt.err (!%p1090_p11)
}
 0x436   : > { %943 = dma.vmem_to_hbm [thread:$0]  (%p1521_p12), %s808_s22, 128, %s1469_s11, %s794_s19  }
 0x437 PF: > { %s819_s9 = sand.u32 1, %s1120_s15   ;;  %p1522_p13 = scmp.ne.s32.totalorder %s1518_s28, 0 }
 0x438   : > { %p1523_p4 = scmp.ge.s32.totalorder %s1132_s18, 2  ;;  %s820_s14 = scalar_lea.sflag [#allocation4], %s819_s9 }
 0x43a   : > { %p950_p5 = pnand %p1523_p4, %p1522_p13 }
 0x43c   : > { %p951_p7 = pneg %p950_p5 }
 0x43e   : > { %1115 = dma.done.wait (%p951_p7), %s820_s14, 128  }
 0x43f   : > { %1117 = vsyncadd (%p951_p7), %s820_s14, 4294967168  ;;  %p17_p8 = scmp.ge.s32.totalorder %s1189_s21, 4   ;;  %s1524_s15 = smov %s1124_s16 }
 0x440   : > { %s1525_s16 = smov %s1128_s17  ;;  %s1526_s17 = smov %s1201_s24 }
 0x441   : > { %s1527_s18 = smov %s1189_s21  ;;  %19 = sbr.rel (!%p17_p8) target bundleno = 5 (0x5), region = 81 }
 0x446   :  { %825 = vsyncpa [#allocation3], 1 }
 0x447   :  { %827 = vsyncpa [#allocation3 + $0x1], 1 }
 0x448   :  { %828 = vsyncpa [#allocation4], 1 }
 0x449   :  { %830 = vsyncpa [#allocation4 + $0x1], 1 }

</bundles_post_ra>
